<compile_context>
chip_gen: v7x
topology: tpu7x:2x2x1
jax: 0.10.0
libtpu: 0.0.40
codegen_flags: <defaults>
</compile_context>

<pallas_src>
import functools
import math

import jax
import jax.numpy as jnp
from jax.experimental import pallas as pl
from jax.experimental.pallas import tpu as pltpu


def _round_up(x, m):
    return ((x + m - 1) // m) * m


def _fm_loss_kernel(stacked_ref, seg_ref, out_ref, acc_ref, *, nf, n_graphs_pad):
    """One grid step over a node tile.

    stacked_ref: [10 + 3*nf, TILE] f32 (feature-major, nodes on lanes)
    seg_ref:     [1, TILE] int32 (lane-dense segment ids)
    out_ref:     [n_graphs_pad, 1] f32 (per-core partial segment sums)
    acc_ref:     [n_graphs_pad, 1] f32 VMEM scratch accumulator
    """
    inner = pl.program_id(1)

    @pl.when(inner == 0)
    def _():
        acc_ref[...] = jnp.zeros_like(acc_ref)

    # Static row-slices off the single consolidated VMEM block.
    t = stacked_ref[0:1, :]                                   # [1, TILE]
    dx = stacked_ref[1:4, :]                                  # [3, TILE]
    dh = stacked_ref[4:4 + nf, :]                             # [nf, TILE]
    zx = stacked_ref[4 + nf:7 + nf, :]                        # [3, TILE]
    zh = stacked_ref[7 + nf:7 + 2 * nf, :]                    # [nf, TILE]
    x = stacked_ref[7 + 2 * nf:10 + 2 * nf, :]                # [3, TILE]
    h = stacked_ref[10 + 2 * nf:10 + 3 * nf, :]               # [nf, TILE]

    half_pi = jnp.float32(0.5 * math.pi)
    c = jnp.cos(half_pi * t)                                  # [1, TILE]
    s = jnp.sin(half_pi * t)                                  # [1, TILE]

    # OT / linear path for coordinates: u_x = x - z_x
    err_x = dx - (x - zx)                                     # [3, TILE]
    # VP (trig) path for features: u_h = (pi/2)(cos(pi t/2) h - sin(pi t/2) z_h)
    err_h = dh - half_pi * (c * h - s * zh)                   # [nf, TILE]

    # Per-node squared-error loss: small sublane reductions, lane-dense result.
    per_node = (jnp.sum(err_x * err_x, axis=0, keepdims=True)
                + jnp.sum(err_h * err_h, axis=0, keepdims=True))   # [1, TILE]

    # Scatter-add into per-graph bins: graphs on sublanes, nodes on lanes.
    # Mask-select + lane reduce keeps everything in f32 VPU/XLU ops.
    seg = seg_ref[...]                                        # [1, TILE] int32
    tile = seg.shape[1]
    gids = jax.lax.broadcasted_iota(jnp.int32, (n_graphs_pad, tile), 0)
    contrib = jnp.where(gids == seg, per_node, jnp.float32(0.0))    # [G, TILE]
    acc_ref[...] += jnp.sum(contrib, axis=1, keepdims=True)         # [G, 1]

    @pl.when(inner == pl.num_programs(1) - 1)
    def _():
        out_ref[...] = acc_ref[...]


def fm_loss(t, dx_t, dh_t, z_x, z_h, x, h, segment_ids, *, n_graphs,
            node_tile=8192, num_cores=2):
    """Returns per-molecule loss of shape [n_graphs] (matches scatter_mean)."""
    n_nodes = x.shape[0]
    nf = h.shape[1]
    f_total = 10 + 3 * nf

    # Clamp the tile for tiny inputs, keep it lane-aligned (multiple of 128).
    node_tile = max(128, min(_round_up(node_tile, 128), _round_up(n_nodes, 128)))

    n_blocks = -(-n_nodes // node_tile)                       # ceil-div
    num_cores = max(1, min(num_cores, n_blocks))
    n_blocks = _round_up(n_blocks, num_cores)
    inner_steps = n_blocks // num_cores
    n_nodes_pad = n_blocks * node_tile
    pad = n_nodes_pad - n_nodes

    # Graphs live on the sublane axis -> only round up to 8.
    n_graphs_pad = _round_up(max(n_graphs, 1), 8)

    f32 = lambda a: jnp.asarray(a, jnp.float32)
    # One consolidated feature-major slab: rows = [t, dx, dh, zx, zh, x, h].
    node_mat = jnp.concatenate(
        [f32(t).reshape(n_nodes, 1), f32(dx_t), f32(dh_t),
         f32(z_x), f32(z_h), f32(x), f32(h)], axis=1)         # [n_nodes, F]
    stacked = jnp.pad(node_mat.T, ((0, 0), (0, pad)))         # [F, n_nodes_pad]
    # Padded nodes get an out-of-range id so they never match any graph row.
    seg_row = jnp.pad(jnp.asarray(segment_ids, jnp.int32).reshape(1, n_nodes),
                      ((0, 0), (0, pad)), constant_values=n_graphs_pad)

    kernel = functools.partial(_fm_loss_kernel, nf=nf, n_graphs_pad=n_graphs_pad)

    partial_sums = pl.pallas_call(
        kernel,
        out_shape=jax.ShapeDtypeStruct((num_cores, n_graphs_pad, 1), jnp.float32),
        grid_spec=pltpu.PrefetchScalarGridSpec(
            num_scalar_prefetch=0,
            grid=(num_cores, inner_steps),
            in_specs=[
                pl.BlockSpec((f_total, node_tile),
                             lambda c, i: (0, c * inner_steps + i)),
                pl.BlockSpec((1, node_tile),
                             lambda c, i: (0, c * inner_steps + i)),
            ],
            out_specs=pl.BlockSpec((None, n_graphs_pad, 1),
                                   lambda c, i: (c, 0, 0)),
            scratch_shapes=[pltpu.VMEM((n_graphs_pad, 1), jnp.float32)]),
        compiler_params=pltpu.CompilerParams(
            dimension_semantics=("parallel", "arbitrary"),
            vmem_limit_bytes=32 * 1024 * 1024),
    )(stacked, seg_row)

    # Combine per-core partials; counts and the scatter_mean divide are done
    # here (they are independent of the loss, per the review).
    seg_sum = jnp.sum(partial_sums[:, :n_graphs, 0], axis=0)        # [n_graphs]
    counts = jnp.bincount(jnp.asarray(segment_ids, jnp.int32),
                          length=n_graphs).astype(jnp.float32)
    return seg_sum / jnp.maximum(counts, 1.0)


def fm_loss_reference(t, dx_t, dh_t, z_x, z_h, x, h, segment_ids, *, n_graphs):
    """Pure-JAX reference for validation."""
    t = jnp.asarray(t, jnp.float32).reshape(-1, 1)
    target_x = x - z_x
    half_pi = 0.5 * math.pi
    target_h = half_pi * (jnp.cos(half_pi * t) * h - jnp.sin(half_pi * t) * z_h)
    loss = (jnp.sum((dx_t - target_x) ** 2, axis=-1)
            + jnp.sum((dh_t - target_h) ** 2, axis=-1))
    onehot = (segment_ids[None, :] == jnp.arange(n_graphs)[:, None]).astype(jnp.float32)
    seg_sum = onehot @ loss
    seg_cnt = jnp.maximum(onehot.sum(axis=1), 1.0)
    return seg_sum / seg_cnt


def _run_case(key, n_nodes, nf, segment_ids, n_graphs, **kw):
    ks = jax.random.split(key, 7)
    t = jax.random.uniform(ks[0], (n_nodes, 1), dtype=jnp.float32)
    dx_t = jax.random.normal(ks[1], (n_nodes, 3), dtype=jnp.float32)
    dh_t = jax.random.normal(ks[2], (n_nodes, nf), dtype=jnp.float32)
    z_x = jax.random.normal(ks[3], (n_nodes, 3), dtype=jnp.float32)
    z_h = jax.random.normal(ks[4], (n_nodes, nf), dtype=jnp.float32)
    x = jax.random.normal(ks[5], (n_nodes, 3), dtype=jnp.float32)
    h = jax.random.normal(ks[6], (n_nodes, nf), dtype=jnp.float32)

    out = fm_loss(t, dx_t, dh_t, z_x, z_h, x, h, segment_ids,
                  n_graphs=n_graphs, **kw)
    out = jax.block_until_ready(out)
    ref = fm_loss_reference(t, dx_t, dh_t, z_x, z_h, x, h, segment_ids,
                            n_graphs=n_graphs)
    assert out.shape == (n_graphs,)
    assert jnp.allclose(out, ref, rtol=1e-4, atol=1e-4), (out, ref)


if __name__ == "__main__":
    key = jax.random.PRNGKey(0)

    # Case 1: the small example from the module docstring — 3 molecules with
    # 3, 4, 9 atoms respectively.
    seg1 = jnp.array([0, 0, 0, 1, 1, 1, 1, 2, 2, 2, 2, 2, 2, 2, 2, 2],
                     dtype=jnp.int32)
    _run_case(jax.random.fold_in(key, 1), n_nodes=16, nf=8,
              segment_ids=seg1, n_graphs=3)

    # Case 2: exercises multi-block accumulation, node padding and the
    # parallel per-core partial-sum path.
    n_nodes2, n_graphs2 = 300, 7
    seg2 = jax.random.randint(jax.random.fold_in(key, 2), (n_nodes2,),
                              0, n_graphs2, dtype=jnp.int32)
    _run_case(jax.random.fold_in(key, 3), n_nodes=n_nodes2, nf=5,
              segment_ids=seg2, n_graphs=n_graphs2,
              node_tile=128, num_cores=2)

    print("KERNEL_OK")
</pallas_src>

<mosaic_0001>
module attributes {stable_mosaic.version = 11 : i64} {
  func.func @_fm_loss_kernel(%arg0: i32, %arg1: i32, %arg2: memref<34x128xf32, #tpu.memory_space<vmem>>, %arg3: memref<1x128xi32, #tpu.memory_space<vmem>>, %arg4: memref<1x8x1xf32, #tpu.memory_space<vmem>>, %arg5: memref<8x1xf32, #tpu.memory_space<vmem>>) attributes {dimension_semantics = [#tpu.dimension_semantics<parallel>, #tpu.dimension_semantics<arbitrary>], iteration_bounds = array<i64: 1, 1>, scalar_prefetch = 0 : i64, scratch_operands = 1 : i64, tpu.core_type = #tpu.core_type<tc>, window_params = [{transform_indices = @transform_0, window_bounds = array<i64: 34, 128>}, {transform_indices = @transform_1, window_bounds = array<i64: 1, 128>}, {transform_indices = @transform_2, window_bounds = array<i64: 1, 8, 1>}]} {
    %c0_i32 = arith.constant 0 : i32
    %0 = arith.cmpi eq, %arg1, %c0_i32 : i32
    %1 = arith.extui %0 : i1 to i32
    %c0_i32_0 = arith.constant 0 : i32
    %2 = arith.cmpi ne, %1, %c0_i32_0 : i32
    scf.if %2 {
      %cst_22 = arith.constant 0.000000e+00 : f32
      %49 = vector.broadcast %cst_22 : f32 to vector<8x1xf32>
      %c0_23 = arith.constant 0 : index
      %c0_24 = arith.constant 0 : index
      %50 = vector.load %arg5[%c0_23, %c0_24] : memref<8x1xf32, #tpu.memory_space<vmem>>, vector<8x1xf32>
      tpu.vector_store %arg5[%c0_23, %c0_24], %49 {strides = array<i32>} : memref<8x1xf32, #tpu.memory_space<vmem>>, vector<8x1xf32>,
    } else {
    }
    %c0 = arith.constant 0 : index
    %c0_1 = arith.constant 0 : index
    %3 = vector.load %arg2[%c0, %c0_1] : memref<34x128xf32, #tpu.memory_space<vmem>>, vector<1x128xf32>
    %c1 = arith.constant 1 : index
    %c0_2 = arith.constant 0 : index
    %4 = vector.load %arg2[%c1, %c0_2] : memref<34x128xf32, #tpu.memory_space<vmem>>, vector<3x128xf32>
    %c4 = arith.constant 4 : index
    %c0_3 = arith.constant 0 : index
    %5 = vector.load %arg2[%c4, %c0_3] : memref<34x128xf32, #tpu.memory_space<vmem>>, vector<8x128xf32>
    %c12 = arith.constant 12 : index
    %c0_4 = arith.constant 0 : index
    %6 = vector.load %arg2[%c12, %c0_4] : memref<34x128xf32, #tpu.memory_space<vmem>>, vector<3x128xf32>
    %c15 = arith.constant 15 : index
    %c0_5 = arith.constant 0 : index
    %7 = vector.load %arg2[%c15, %c0_5] : memref<34x128xf32, #tpu.memory_space<vmem>>, vector<8x128xf32>
    %c23 = arith.constant 23 : index
    %c0_6 = arith.constant 0 : index
    %8 = vector.load %arg2[%c23, %c0_6] : memref<34x128xf32, #tpu.memory_space<vmem>>, vector<3x128xf32>
    %c26 = arith.constant 26 : index
    %c0_7 = arith.constant 0 : index
    %9 = vector.load %arg2[%c26, %c0_7] : memref<34x128xf32, #tpu.memory_space<vmem>>, vector<8x128xf32>
    %cst = arith.constant 1.57079637 : f32
    %10 = vector.broadcast %cst : f32 to vector<1x128xf32>
    %11 = arith.mulf %10, %3 : vector<1x128xf32>
    %12 = math.cos %11 : vector<1x128xf32>
    %cst_8 = arith.constant 1.57079637 : f32
    %13 = vector.broadcast %cst_8 : f32 to vector<1x128xf32>
    %14 = arith.mulf %13, %3 : vector<1x128xf32>
    %15 = math.sin %14 : vector<1x128xf32>
    %16 = arith.subf %8, %6 : vector<3x128xf32>
    %17 = arith.subf %4, %16 : vector<3x128xf32>
    %18 = vector.broadcast %12 : vector<1x128xf32> to vector<8x128xf32>
    %19 = arith.mulf %18, %9 : vector<8x128xf32>
    %20 = vector.broadcast %15 : vector<1x128xf32> to vector<8x128xf32>
    %21 = arith.mulf %20, %7 : vector<8x128xf32>
    %22 = arith.subf %19, %21 : vector<8x128xf32>
    %cst_9 = arith.constant 1.57079637 : f32
    %23 = vector.broadcast %cst_9 : f32 to vector<8x128xf32>
    %24 = arith.mulf %23, %22 : vector<8x128xf32>
    %25 = arith.subf %5, %24 : vector<8x128xf32>
    %26 = arith.mulf %17, %17 : vector<3x128xf32>
    %cst_10 = arith.constant dense<0.000000e+00> : vector<128xf32>
    %27 = vector.multi_reduction <add>, %26, %cst_10 [0] : vector<3x128xf32> to vector<128xf32>
    %28 = vector.shape_cast %27 : vector<128xf32> to vector<1x128xf32>
    %29 = arith.mulf %25, %25 : vector<8x128xf32>
    %cst_11 = arith.constant dense<0.000000e+00> : vector<128xf32>
    %30 = vector.multi_reduction <add>, %29, %cst_11 [0] : vector<8x128xf32> to vector<128xf32>
    %31 = vector.shape_cast %30 : vector<128xf32> to vector<1x128xf32>
    %32 = arith.addf %28, %31 : vector<1x128xf32>
    %c0_12 = arith.constant 0 : index
    %c0_13 = arith.constant 0 : index
    %33 = vector.load %arg3[%c0_12, %c0_13] : memref<1x128xi32, #tpu.memory_space<vmem>>, vector<1x128xi32>
    %34 = tpu.iota {dimensions = array<i32: 0>} : vector<8x128xi32>
    %35 = vector.broadcast %33 : vector<1x128xi32> to vector<8x128xi32>
    %36 = arith.cmpi eq, %34, %35 : vector<8x128xi32>
    %cst_14 = arith.constant 0.000000e+00 : f32
    %37 = vector.shape_cast %32 : vector<1x128xf32> to vector<1x128xf32>
    %38 = vector.broadcast %37 : vector<1x128xf32> to vector<8x128xf32>
    %39 = vector.broadcast %cst_14 : f32 to vector<8x128xf32>
    %40 = arith.select %36, %38, %39 : vector<8x128xi1>, vector<8x128xf32>
    %c0_15 = arith.constant 0 : index
    %c0_16 = arith.constant 0 : index
    %41 = vector.load %arg5[%c0_15, %c0_16] : memref<8x1xf32, #tpu.memory_space<vmem>>, vector<8x1xf32>
    %cst_17 = arith.constant dense<0.000000e+00> : vector<8xf32>
    %42 = vector.multi_reduction <add>, %40, %cst_17 [1] : vector<8x128xf32> to vector<8xf32>
    %43 = vector.shape_cast %42 : vector<8xf32> to vector<8x1xf32>
    %44 = arith.addf %41, %43 : vector<8x1xf32>
    %c0_18 = arith.constant 0 : index
    %c0_19 = arith.constant 0 : index
    %45 = vector.load %arg5[%c0_18, %c0_19] : memref<8x1xf32, #tpu.memory_space<vmem>>, vector<8x1xf32>
    tpu.vector_store %arg5[%c0_18, %c0_19], %44 {strides = array<i32>} : memref<8x1xf32, #tpu.memory_space<vmem>>, vector<8x1xf32>,
    %c0_i32_20 = arith.constant 0 : i32
    %46 = arith.cmpi eq, %arg1, %c0_i32_20 : i32
    %47 = arith.extui %46 : i1 to i32
    %c0_i32_21 = arith.constant 0 : i32
    %48 = arith.cmpi ne, %47, %c0_i32_21 : i32
    scf.if %48 {
      %c0_22 = arith.constant 0 : index
      %c0_23 = arith.constant 0 : index
      %49 = vector.load %arg5[%c0_22, %c0_23] : memref<8x1xf32, #tpu.memory_space<vmem>>, vector<8x1xf32>
      %c0_24 = arith.constant 0 : index
      %c0_25 = arith.constant 0 : index
      %c0_26 = arith.constant 0 : index
      %50 = vector.load %arg4[%c0_24, %c0_25, %c0_26] : memref<1x8x1xf32, #tpu.memory_space<vmem>>, vector<1x8x1xf32>
      %51 = vector.shape_cast %50 : vector<1x8x1xf32> to vector<8x1xf32>
      %52 = vector.shape_cast %49 : vector<8x1xf32> to vector<1x8x1xf32>
      tpu.vector_store %arg4[%c0_24, %c0_25, %c0_26], %52 {strides = array<i32>} : memref<1x8x1xf32, #tpu.memory_space<vmem>>, vector<1x8x1xf32>,
    } else {
    }
    return
  }
  func.func @transform_0(%arg0: i32, %arg1: i32) -> (i32, i32) {
    %c1_i32 = arith.constant 1 : i32
    %0 = arith.muli %arg0, %c1_i32 : i32
    %1 = arith.addi %0, %arg1 : i32
    %c0_i32 = arith.constant 0 : i32
    %c0_i32_0 = arith.constant 0 : i32
    return %c0_i32, %1 : i32, i32
  }
  func.func @transform_1(%arg0: i32, %arg1: i32) -> (i32, i32) {
    %c1_i32 = arith.constant 1 : i32
    %0 = arith.muli %arg0, %c1_i32 : i32
    %1 = arith.addi %0, %arg1 : i32
    %c0_i32 = arith.constant 0 : i32
    %c0_i32_0 = arith.constant 0 : i32
    return %c0_i32, %1 : i32, i32
  }
  func.func @transform_2(%arg0: i32, %arg1: i32) -> (i32, i32, i32) {
    %c0_i32 = arith.constant 0 : i32
    %c0_i32_0 = arith.constant 0 : i32
    %c0_i32_1 = arith.constant 0 : i32
    return %arg0, %c0_i32, %c0_i32_0 : i32, i32, i32
  }
}

</mosaic_0001>

<bundles_post_ra>
// kernel: tpu_custom_call.1
= control target key start
LH: loop header
LB: loop body
LE: loop exit
PB: predicated region body
PF: predicated region fallthrough
CT: control target
= control target key end

     0   :  { %7 = vsyncpa [#allocation4], 0  ;;  %s375_s9 = smov [#allocation3]   ;;  %s442_s0 = inlined_call_operand.hbm [shape: f32[34,128], index: 0, kind: input, shape index: {}]   ;;  %s443_s1 = inlined_call_operand.vmem [shape: s32[1,128], index: 1, kind: input, shape index: {}]   ;;  %s444_s2 = inlined_call_operand.vmem [shape: f32[1,8,1], index: 2, kind: output, shape index: {}]  }
   0x1   :  { %s16_s10 = sshll.u32 %s375_s9, 4  ;;  %s351_s13 = scalar_lea.hbm %s442_s0, 640  ;;  %s17_s10 = int_to_ptr.vmem [resolvable:$true] %s16_s10 }
   0x2   :  { %p352_p0 = scmp.ne.s32.totalorder %s442_s0, %s351_s13  ;;  %p355_p1 = scmp.lt.u32.totalorder %s351_s13, %s442_s0 }
   0x4   :  { %p357_p2 = pnand %p355_p1, %p352_p0 }
   0x6   :  { %360 = shalt.err (!%p357_p2)
}
   0x7   :  { %s361_s18 = scalar_lea.vmem %s17_s10, 640  ;;  %p366_p4 = scmp.lt.s32.totalorder %s17_s10, %s17_s10 }
   0x8   :  { %p362_p3 = scmp.ne.s32.totalorder %s17_s10, %s361_s18  ;;  %p367_p5 = scmp.lt.s32.totalorder %s361_s18, %s361_s18 }
   0xa   :  { %p368_p6 = por %p367_p5, %p366_p4 }
   0xc   :  { %p369_p7 = pnand %p368_p6, %p362_p3 }
   0xe   :  { %372 = shalt.err (!%p369_p7)
}
   0xf   :  { %s376_s19 = smov 128   ;;  %s377_s20 = smov 8  }
  0x10   :  { %22 = dma.hbm_to_vmem [thread:$0]  %s442_s0, 640, %s17_s10, [#allocation4], %s376_s19, %s376_s19, %s377_s20  }
  0x11   :  { %373 = dma.done.wait [#allocation4], 640  }
  0x12   :  { %374 = vsyncadd [#allocation4], 4294966656  ;;  %vm47_vm0 = vcmask 7168   ;;  %v378_v0 = vmov 0.0   ;;  %v49_v1 = vld [vmem:[#allocation3] sm:$0x1] }
  0x13   :  { %48 = vst.msk [vmem:[#allocation2] sm:$0xff] %vm47_vm0, %v378_v0  ;;  %v413_v2 = vmul.f32 1.5707964, %v49_v1  ;;  %v379_v14 = vmov 683565275   ;;  %vm280_vm14 = vcmask 1042432  }
  0x14   :  { %v380_v16 = vmov 2475754826   ;;  %v381_v18 = vmov 2131351028   ;;  %v382_v20 = vmov 2102212464  }
  0x15   :  { %v60_v3 = vand.u32 2139095040, %v413_v2  ;;  %v57_v5 = vand.u32 2147483647, %v413_v2  ;;  %v383_v22 = vmov 920167782   ;;  %vm59_vm8 = vcmp.lt.s32.totalorder %v413_v2, 0 }
  0x16   :  { %v384_v29 = vmov 1326507024  }
  0x17   :  { %v61_v4 = vshrl.u32 %v60_v3, 23  ;;  %v64_v8 = vand.u32 8388607, %v57_v5  ;;  %vm58_vm9 = vcmp.le.f32.partialorder %v57_v5, 0.7853982 }
  0x19   :  { %v324_v6 = vadd.s32 4294967169, %v61_v4  ;;  %v65_v11 = vor.u32 8388608, %v64_v8 }
  0x1b   :  { %v67_v7 = vadd.s32 1, %v324_v6  ;;  %v105_v31 = vshll.u32 %v65_v11, 8 }
  0x1d   :  { %vm68_vm1 = vcmp.gt.s32.totalorder %v67_v7, 0 }
  0x1e   :  { %v69_v9 = vsel %vm68_vm1, %v67_v7, 0 }
  0x1f   :  { %v71_v10 = vand.u32 31, %v69_v9  ;;  %v70_v12 = vshrl.u32 %v69_v9, 5 }
  0x21   :  { %v72_v13 = vsub.s32 32, %v71_v10  ;;  %v74_v15 = vshll.u32 %v379_v14, %v71_v10  ;;  %v77_v17 = vshll.u32 %v380_v16, %v71_v10  ;;  %v80_v19 = vshll.u32 %v381_v18, %v71_v10 }
  0x22   :  { %v83_v21 = vshll.u32 %v382_v20, %v71_v10  ;;  %v86_v23 = vshll.u32 %v383_v22, %v71_v10  ;;  %vm89_vm2 = vcmp.lt.s32.totalorder %v70_v12, 1  ;;  %vm92_vm3 = vcmp.lt.s32.totalorder %v70_v12, 4 }
  0x23   :  { %v73_v24 = vshrl.u32 %v379_v14, %v72_v13  ;;  %v75_v25 = vshrl.u32 %v380_v16, %v72_v13  ;;  %v78_v26 = vshrl.u32 %v381_v18, %v72_v13  ;;  %v81_v27 = vshrl.u32 %v382_v20, %v72_v13  ;;  %v52_v20 = vld [vmem:[#allocation3 + $0xc] sm:$0x7] }
  0x24   :  { %v84_v28 = vshrl.u32 %v383_v22, %v72_v13  ;;  %v87_v30 = vshrl.u32 %v384_v29, %v72_v13  ;;  %vm90_vm4 = vcmp.lt.s32.totalorder %v70_v12, 2  ;;  %vm91_vm5 = vcmp.lt.s32.totalorder %v70_v12, 3 }
  0x25   :  { %v76_v32 = vor.u32 %v75_v25, %v74_v15  ;;  %v79_v33 = vor.u32 %v78_v26, %v77_v17  ;;  %v82_v34 = vor.u32 %v81_v27, %v80_v19  ;;  %v50_v26 = vld [vmem:[#allocation3 + $0x1] sm:$0x7]  ;;  %v266_v27 = vlaneseq }
  0x26   :  { %v85_v35 = vor.u32 %v84_v28, %v83_v21  ;;  %v88_v36 = vor.u32 %v87_v30, %v86_v23  ;;  %v54_v21 = vld [vmem:[#allocation3 + $0x17] sm:$0x7] }
  0x27   :  { %v93_v37 = vsel %vm89_vm2, %v73_v24, %v76_v32  ;;  %v94_v38 = vsel %vm92_vm3, %v82_v34, 2102212464  ;;  %v97_v39 = vsel %vm89_vm2, %v76_v32, %v79_v33  ;;  %v101_v40 = vsel %vm89_vm2, %v79_v33, %v82_v34 }
  0x28   :  { %v95_v41 = vsel %vm91_vm5, %v79_v33, %v94_v38  ;;  %v98_v42 = vsel %vm92_vm3, %v85_v35, 920167782  ;;  %v102_v43 = vsel %vm92_vm3, %v88_v36, 1326507024  ;;  %v264_v25 = vsub.f32 %v54_v21, %v52_v20 }
  0x29   :  { %v99_v44 = vsel %vm91_vm5, %v82_v34, %v98_v42  ;;  %v103_v45 = vsel %vm91_vm5, %v85_v35, %v102_v43  ;;  %v96_v46 = vsel %vm90_vm4, %v93_v37, %v95_v41  ;;  %vm149_vm2 = vweird.f32 %v413_v2 }
  0x2a   :  { %v100_v47 = vsel %vm90_vm4, %v97_v39, %v99_v44  ;;  %v104_v48 = vsel %vm90_vm4, %v101_v40, %v103_v45  ;;  %v112_v53 = vmul.u32 %v105_v31, %v96_v46  ;;  %v265_v30 = vsub.f32 %v50_v26, %v264_v25  ;;  %v53_v44 = vld [vmem:[#allocation3 + $0xf] sm:$0xff]  ;;  %v55_v45 = vld [vmem:[#allocation3 + $0x1a] sm:$0xff] }
  0x2b   :  { %v419_v49 = vmul.u32.u64.low %v105_v31, %v104_v48  ;;  %v420_v50 = vmul.u32.u64.high %v105_v31, %v104_v48, %v419_v49  ;;  %v422_v51 = vmul.u32.u64.low %v105_v31, %v100_v47  ;;  %v423_v52 = vmul.u32.u64.high %v105_v31, %v100_v47, %v422_v51 }
  0x2c   :  { %v267_v31 = vshrl.u32 %v266_v27, 7  ;;  %v279_v5 = vmul.f32 %v265_v30, %v265_v30 }
  0x2d   :  { %vm114_vm6 = vc.u32 %v420_v50, %v422_v51  ;;  %v115_v54 = vadd.s32 1, %v423_v52  ;;  %v113_v1 = vadd.s32 %v422_v51, %v420_v50 }
  0x2e   :  { %v268_v38 = vsub.s32 0, %v267_v31  ;;  %v281_v41 = vsel %vm280_vm14, %v279_v5, 0.0 }
  0x2f   :  { %v116_v55 = vsel %vm114_vm6, %v115_v54, %v423_v52  ;;  %v282_v50 = vrot.slane %v281_v41, 4 }
  0x30   :  { %v117_v56 = vadd.s32 %v116_v55, %v112_v53 }
  0x31   :  { %v283_v54 = vadd.f32 %v282_v50, %v281_v41 }
  0x32   :  { %v118_v57 = vadd.s32 536870912, %v117_v56 }
  0x34   :  { %v119_v58 = vshrl.u32 %v118_v57, 30  ;;  %v284_v57 = vrot.slane %v283_v54, 2 }
  0x36   :  { %v120_v59 = vshll.u32 %v119_v58, 30  ;;  %v143_v15 = vsub.s32 4, %v119_v58 }
  0x38   :  { %v121_v60 = vsub.s32 %v117_v56, %v120_v59  ;;  %v144_v18 = vsel %vm59_vm8, %v143_v15, %v119_v58  ;;  %v285_v59 = vadd.f32 %v284_v57, %v283_v54 }
  0x39   :  { %v146_v23 = vsel %vm58_vm9, 0, %v144_v18 }
  0x3a   :  { %v123_v61 = vsub.s32 0, %v121_v60  ;;  %v253_v24 = vadd.s32 3, %v146_v23  ;;  %v150_v28 = vand.u32 3, %v146_v23 }
  0x3c   :  { %v325_v62 = vmin.u32 %v123_v61, %v121_v60  ;;  %v254_v29 = vand.u32 3, %v253_v24  ;;  %vm155_vm10 = vcmp.eq.s32.totalorder %v150_v28, 2  ;;  %vm152_vm12 = vcmp.eq.s32.totalorder %v150_v28, 0 }
  0x3d   :  { %vm151_vm15 = vcmp.lt.s32.totalorder %v150_v28, 2 }
  0x3e   :  { %v125_v63 = vclz %v325_v62  ;;  %vm259_vm11 = vcmp.eq.s32.totalorder %v254_v29, 2  ;;  %vm256_vm13 = vcmp.eq.s32.totalorder %v254_v29, 0  ;;  %vm255_vm1 = vcmp.lt.s32.totalorder %v254_v29, 2 }
  0x3f   :  { %v286_v62 = vrot.slane %v285_v59, 1 }
  0x40   :  { %v326_v0 = vadd.s32 4294967294, %v125_v63 }
  0x42   :  { %vm327_vm7 = vcmp.lt.s32.totalorder %v326_v0, 0 }
  0x43   :  { %v128_v3 = vsel %vm327_vm7, 0, %v326_v0 }
  0x44   :  { %v129_v4 = vsub.s32 32, %v128_v3  ;;  %v130_v6 = vshll.u32 %v121_v60, %v128_v3  ;;  %v133_v7 = vsub.s32 4294967266, %v128_v3 }
  0x46   :  { %v131_v8 = vshrl.u32 %v113_v1, %v129_v4  ;;  %v134_v9 = vadd.s32 127, %v133_v7  ;;  %v287_v1 = vadd.f32 %v286_v62, %v285_v59  ;;  %v332_v4 = vld [vmem:[%s443_s1] ss:$0 sm:$0xff] }
  0x47   :  { %vm303_vm3 = vcmp.eq.s32.totalorder %v267_v31, %v332_v4 }
  0x48   :  { %v132_v10 = vor.u32 %v131_v8, %v130_v6  ;;  %v135_v11 = vshll.u32 %v134_v9, 23  ;;  %v305_v9 = vld [vmem:[#allocation2] sm:$0xff] }
  0x4a   :  { %v136_v12 = vor.u32 4788187, %v135_v11  ;;  %v139_v13 = vcvt.s32.f32 %v132_v10 }
  0x4c   :  { %v137_v14 = vand.u32 2147483647, %v136_v12 }
  0x4e   :  { %v140_v16 = vmul.f32 %v139_v13, %v137_v14 }
  0x50   :  { %v141_v17 = vxor.u32 2147483648, %v140_v16 }
  0x52   :  { %v142_v19 = vsel %vm59_vm8, %v141_v17, %v140_v16 }
  0x53   :  { %v145_v22 = vsel %vm58_vm9, %v413_v2, %v142_v19  ;;  %v51_v2 = vld [vmem:[#allocation3 + $0x4] sm:$0xff] }
  0x54   :  { %347 = vcosq.f32 %v145_v22 }
  0x55   :  { %349 = vsinq.f32 %v145_v22 }
  0x5e   :  { %v348_v32 = vpop.eup %347 }
  0x5f   :  { %v350_v33 = vpop.eup %349  ;;  %v156_v34 = vxor.u32 2147483648, %v348_v32 }
  0x60   :  { %v153_v35 = vxor.u32 2147483648, %v350_v33 }
  0x61   :  { %v157_v36 = vsel %vm155_vm10, %v156_v34, %v350_v33  ;;  %v261_v37 = vsel %vm259_vm11, %v156_v34, %v350_v33 }
  0x62   :  { %v154_v39 = vsel %vm152_vm12, %v348_v32, %v153_v35  ;;  %v258_v40 = vsel %vm256_vm13, %v348_v32, %v153_v35 }
  0x63   :  { %v158_v42 = vsel %vm151_vm15, %v154_v39, %v157_v36  ;;  %v262_v43 = vsel %vm255_vm1, %v258_v40, %v261_v37 }
  0x64   :  { %v159_v46 = vsel %vm149_vm2, nan, %v158_v42  ;;  %v263_v47 = vsel %vm149_vm2, nan, %v262_v43 }
  0x65   :  { %v269_v48 = vrot.slane %v159_v46, %v268_v38  ;;  %v274_v49 = vrot.slane %v263_v47, %v268_v38 }
  0x67   :  { %v270_v51 = vmul.f32 %v269_v48, %v55_v45  ;;  %v275_v52 = vmul.f32 %v274_v49, %v53_v44 }
  0x69   :  { %v276_v53 = vsub.f32 %v270_v51, %v275_v52 }
  0x6b   :  { %v277_v55 = vmul.f32 1.5707964, %v276_v53 }
  0x6d   :  { %v278_v56 = vsub.f32 %v51_v2, %v277_v55 }
  0x6f   :  { %v288_v58 = vmul.f32 %v278_v56, %v278_v56 }
  0x71   :  { %v289_v60 = vrot.slane %v288_v58, 4 }
  0x73   :  { %v290_v61 = vadd.f32 %v289_v60, %v288_v58 }
  0x75   :  { %v291_v63 = vrot.slane %v290_v61, 2 }
  0x77   :  { %v292_v0 = vadd.f32 %v291_v63, %v290_v61 }
  0x79   :  { %v293_v3 = vrot.slane %v292_v0, 1 }
  0x7b   :  { %v294_v6 = vadd.f32 %v293_v3, %v292_v0 }
  0x7d   :  { %v295_v7 = vadd.f32 %v294_v6, %v287_v1 }
  0x7f   :  { %v304_v8 = vsel %vm303_vm3, %v295_v7, 0.0 }
  0x80   :  { %306 = vadd.xlane.f32.xlu0 %v304_v8 }
 0x10d   :  { %v307_v10 = vpop.xlane.xlu0 %306 }
 0x10e   :  { %v308_v11 = vadd.f32 %v307_v10, %v305_v9 }
 0x110   :  { %310 = vst.msk [vmem:[#allocation2] sm:$0xff] %vm47_vm0, %v308_v11 }
 0x117   :  { %v314_v12 = vld [vmem:[#allocation2] sm:$0xff] }
 0x118   :  { %315 = vst.msk [vmem:[%s444_s2] sm:$0xff] %vm47_vm0, %v314_v12 }
 0x119   :  { %320 = vsyncpa [#allocation4], 1 }

</bundles_post_ra>
